<compile_context>
chip_gen: v7x
topology: tpu7x:2x2x1
jax: 0.10.0
libtpu: 0.0.40
codegen_flags: <defaults>
</compile_context>

<pallas_src>
import functools

import jax
import jax.numpy as jnp
from jax.experimental import pallas as pl
from jax.experimental.pallas import tpu as pltpu


def _round_up(x: int, m: int) -> int:
    return ((x + m - 1) // m) * m


def _cdiv(a: int, b: int) -> int:
    return (a + b - 1) // b


def _vmem_capacity_bytes() -> int:
    """Per-core VMEM capacity; conservative 64 MiB (v7x-sized) fallback."""
    try:
        cap = int(pltpu.get_tpu_info().vmem_capacity_bytes)
        if cap > 0:
            return cap
    except Exception:
        pass
    return 64 << 20


def _row_multiple(itemsize: int) -> int:
    # Sub-32-bit dtypes pack rows along sublanes: 16 rows/bf16 tile, 32/int8.
    return max(8, 32 // itemsize)


# --------------------------------------------------------------------------
# Kernel
# --------------------------------------------------------------------------
def _swiglu_kernel(x_ref, w13_ref, w2_ref, o_ref, acc_ref, *, tf: int):
    # x_ref   : (tm, d_model_p)           compute dtype (bf16 by default)
    # w13_ref : (d_model_p, 2*tf)         [w1_chunk | w3_chunk] for this d_ff tile
    # w2_ref  : (tf, d_model_p)
    # o_ref   : (tm, d_model_p)           out dtype
    # acc_ref : (tm, d_model_p) f32 VMEM accumulator (resident across k axis)
    k = pl.program_id(1)

    @pl.when(k == 0)
    def _():
        acc_ref[...] = jnp.zeros_like(acc_ref)

    # Single MXU matmul producing both halves: [h1 | h3], f32 accumulation.
    xw = jnp.dot(x_ref[...], w13_ref[...], preferred_element_type=jnp.float32)
    h1 = xw[:, :tf]
    h3 = xw[:, tf:]

    # SiLU in f32. exp and the approximate reciprocal both issue on the EUP
    # (free slot); VPU only does the multiplies.
    sig = pl.reciprocal(1.0 + jnp.exp(-h1), approx=True)
    g = (h1 * sig) * h3

    # Second GEMM: accumulate this d_ff chunk's contribution.
    acc_ref[...] += jnp.dot(
        g.astype(w2_ref.dtype), w2_ref[...], preferred_element_type=jnp.float32
    )

    @pl.when(k == pl.num_programs(1) - 1)
    def _():
        o_ref[...] = acc_ref[...].astype(o_ref.dtype)


# --------------------------------------------------------------------------
# One-time weight packing (hoisted out of the per-call forward)
# --------------------------------------------------------------------------
def pack_swiglu_weights(w1, w3, w2, *, compute_dtype=jnp.bfloat16, tf=None):
    """Cast, pad and fuse [w1 | w3] per d_ff chunk.  Call ONCE at init.

    w1 : (d_model, d_ff)   (pre-transposed vs. nn.Linear, no bias)
    w3 : (d_model, d_ff)
    w2 : (d_ff, d_model)
    """
    d_model, d_ff = w1.shape
    assert w3.shape == (d_model, d_ff)
    assert w2.shape == (d_ff, d_model)
    compute_dtype = jnp.dtype(compute_dtype)
    itemsize = compute_dtype.itemsize

    dm_p = _round_up(d_model, 128)          # lane-dense last dim
    vmem_cap = _vmem_capacity_bytes()
    budget = int(vmem_cap * 0.75)

    if tf is None:
        # Largest d_ff tile whose double-buffered weight tiles ([w1|w3] + w2)
        # use <= half the budget; the rest is reserved for x/out tiles + acc.
        tf = 128
        for tf_c in (512, 256, 128):
            w_bytes = 2 * (dm_p * 2 * tf_c + tf_c * dm_p) * itemsize
            if w_bytes <= budget // 2:
                tf = tf_c
                break
    tf_eff = min(tf, _round_up(d_ff, 128))  # d_ff tile (multiple of 128)
    ff_p = _round_up(d_ff, tf_eff)
    n_kt = ff_p // tf_eff

    w1_p = jnp.pad(w1.astype(compute_dtype), ((0, dm_p - d_model), (0, ff_p - d_ff)))
    w3_p = jnp.pad(w3.astype(compute_dtype), ((0, dm_p - d_model), (0, ff_p - d_ff)))
    w2_p = jnp.pad(w2.astype(compute_dtype), ((0, ff_p - d_ff), (0, dm_p - d_model)))

    # Fused RHS: columns [k*2tf, (k+1)*2tf) = [w1_k | w3_k].
    w13 = jnp.concatenate(
        [w1_p.reshape(dm_p, n_kt, tf_eff), w3_p.reshape(dm_p, n_kt, tf_eff)],
        axis=-1,
    ).reshape(dm_p, n_kt * 2 * tf_eff)

    return dict(
        w13=w13, w2=w2_p, d_model=d_model, d_ff=d_ff, dm_p=dm_p, ff_p=ff_p,
        tf=tf_eff, n_kt=n_kt, compute_dtype=compute_dtype,
    )


# --------------------------------------------------------------------------
# Forward
# --------------------------------------------------------------------------
def swiglu_forward_packed(x, packed, *, tm=None):
    """SwiGLU forward with pre-packed weights.  x : (..., d_model)."""
    d_model = packed["d_model"]
    dm_p = packed["dm_p"]
    ff_p = packed["ff_p"]
    tf_eff = packed["tf"]
    n_kt = packed["n_kt"]
    compute_dtype = packed["compute_dtype"]
    w13 = packed["w13"]
    w2_p = packed["w2"]

    orig_shape = x.shape
    assert orig_shape[-1] == d_model
    out_dtype = x.dtype
    out_itemsize = jnp.dtype(out_dtype).itemsize
    itemsize = compute_dtype.itemsize

    x2d = x.reshape(-1, d_model).astype(compute_dtype)
    N = x2d.shape[0]

    vmem_cap = _vmem_capacity_bytes()
    budget = int(vmem_cap * 0.75)
    # Heuristic: 64 MiB/TC parts (v7x) have two TensorCores sharing the
    # parallel grid axis; 128 MiB parts (v5e/v6e) are single-TC.
    two_cores = vmem_cap <= (64 << 20)

    row_mult = _row_multiple(itemsize)

    def footprint(tm_c):
        # Double-buffered in/out tiles + f32 accumulator + f32 xw intermediate.
        bufs = 2 * (
            tm_c * dm_p * itemsize            # x tile
            + dm_p * 2 * tf_eff * itemsize    # [w1|w3] tile
            + tf_eff * dm_p * itemsize        # w2 tile
            + tm_c * dm_p * out_itemsize      # out tile
        )
        acc = tm_c * dm_p * 4
        interm = tm_c * 2 * tf_eff * 4 + tm_c * tf_eff * itemsize
        return bufs + acc + interm

    if tm is None:
        # Largest row tile that fits the budget: bigger tm => fewer weight
        # re-streams (arithmetic intensity ~ 2*tm / bytes_per_elem).
        tm = row_mult
        for tm_c in (1024, 512, 256, 128, 64, 32, 16, 8):
            if tm_c % row_mult:
                continue
            if footprint(tm_c) <= budget:
                tm = tm_c
                break

    # Choose the tile count first (bounds row padding to < one row-multiple
    # per tile), then size the actual row tile from it.
    n_tiles = max(1, _cdiv(N, tm))
    if two_cores and N >= 2 * row_mult:
        n_tiles = max(n_tiles, 2)             # keep both TensorCores busy
    tm_eff = _round_up(_cdiv(N, n_tiles), row_mult)
    n_p = n_tiles * tm_eff

    x_p = x2d
    if (n_p, dm_p) != (N, d_model):
        x_p = jnp.pad(x2d, ((0, n_p - N), (0, dm_p - d_model)))

    fp = footprint(tm_eff)
    vmem_limit = int(min(int(vmem_cap * 0.85), max(32 << 20, fp + (8 << 20))))

    cost = pl.CostEstimate(
        flops=6 * n_p * dm_p * ff_p,
        transcendentals=n_p * ff_p,
        bytes_accessed=(
            x_p.size * itemsize
            + (w13.size + w2_p.size) * itemsize * n_tiles  # re-streamed per row tile
            + n_p * dm_p * out_itemsize
        ),
    )

    kernel = functools.partial(_swiglu_kernel, tf=tf_eff)

    out_p = pl.pallas_call(
        kernel,
        out_shape=jax.ShapeDtypeStruct((n_p, dm_p), out_dtype),
        grid_spec=pltpu.PrefetchScalarGridSpec(
            num_scalar_prefetch=0,
            grid=(n_tiles, n_kt),                                     # rows parallel, d_ff reduction last
            in_specs=[
                pl.BlockSpec((tm_eff, dm_p), lambda i, k: (i, 0)),    # x rows
                pl.BlockSpec((dm_p, 2 * tf_eff), lambda i, k: (0, k)),  # [w1|w3] chunk
                pl.BlockSpec((tf_eff, dm_p), lambda i, k: (k, 0)),    # w2 chunk
            ],
            out_specs=pl.BlockSpec((tm_eff, dm_p), lambda i, k: (i, 0)),
            scratch_shapes=[pltpu.VMEM((tm_eff, dm_p), jnp.float32)],
        ),
        compiler_params=pltpu.CompilerParams(
            dimension_semantics=("parallel", "arbitrary"),
            vmem_limit_bytes=vmem_limit,
        ),
        cost_estimate=cost,
    )(x_p, w13, w2_p)

    return out_p[:N, :d_model].reshape(orig_shape).astype(out_dtype)


def swiglu_forward(x, w1, w3, w2, *, compute_dtype=jnp.bfloat16, tm=None, tf=None):
    """Convenience wrapper (packs weights per call — prefer packing once)."""
    packed = pack_swiglu_weights(w1, w3, w2, compute_dtype=compute_dtype, tf=tf)
    return swiglu_forward_packed(x, packed, tm=tm)


if __name__ == "__main__":
    batch, seq = 2, 8
    d_model, d_ff = 32, 128

    key = jax.random.PRNGKey(0)
    kx, k1, k2, k3 = jax.random.split(key, 4)

    x = jax.random.normal(kx, (batch, seq, d_model), dtype=jnp.float32)
    # Deterministic bias-free "Linear" weights stored as (in, out); scale ~ 1/sqrt(fan_in).
    w1 = jax.random.normal(k1, (d_model, d_ff), dtype=jnp.float32) / jnp.sqrt(d_model)
    w3 = jax.random.normal(k3, (d_model, d_ff), dtype=jnp.float32) / jnp.sqrt(d_model)
    w2 = jax.random.normal(k2, (d_ff, d_model), dtype=jnp.float32) / jnp.sqrt(d_ff)

    # Pure-JAX f32 reference of the module's math.
    h1 = x @ w1
    ref_f32 = ((h1 * jax.nn.sigmoid(h1)) * (x @ w3)) @ w2

    # --- 1) Default path: bf16 MXU operands, f32 accumulation + f32 SiLU ---
    packed_bf16 = pack_swiglu_weights(w1, w3, w2)        # packed ONCE (hoisted)
    out_bf16 = swiglu_forward_packed(x, packed_bf16)
    jax.block_until_ready(out_bf16)
    assert out_bf16.shape == (batch, seq, d_model)
    assert out_bf16.dtype == x.dtype

    # Reference with operands rounded to bf16 (f32 accumulation), matching the
    # kernel's MXU path; remaining difference is the approx-EUP sigmoid.
    def _r(a):
        return a.astype(jnp.bfloat16).astype(jnp.float32)

    h1b = _r(x) @ _r(w1)
    gb = _r((h1b * jax.nn.sigmoid(h1b)) * (_r(x) @ _r(w3)))
    ref_bf16 = gb @ _r(w2)
    assert jnp.allclose(out_bf16, ref_bf16, atol=2e-2, rtol=2e-2)

    # --- 2) f32 operand path (tighter check; only the approx sigmoid differs) ---
    out_f32 = swiglu_forward(x, w1, w3, w2, compute_dtype=jnp.float32)
    jax.block_until_ready(out_f32)
    assert jnp.allclose(out_f32, ref_f32, atol=1e-2, rtol=1e-2)

    print("KERNEL_OK")
</pallas_src>

<mosaic_0001>
module attributes {stable_mosaic.version = 11 : i64} {
  func.func @_swiglu_kernel(%arg0: i32, %arg1: i32, %arg2: memref<16x128xbf16, #tpu.memory_space<vmem>>, %arg3: memref<128x256xbf16, #tpu.memory_space<vmem>>, %arg4: memref<128x128xbf16, #tpu.memory_space<vmem>>, %arg5: memref<16x128xf32, #tpu.memory_space<vmem>>, %arg6: memref<16x128xf32, #tpu.memory_space<vmem>>) attributes {dimension_semantics = [#tpu.dimension_semantics<parallel>, #tpu.dimension_semantics<arbitrary>], iteration_bounds = array<i64: 1, 1>, scalar_prefetch = 0 : i64, scratch_operands = 1 : i64, tpu.core_type = #tpu.core_type<tc>, window_params = [{transform_indices = @transform_0, window_bounds = array<i64: 16, 128>}, {transform_indices = @transform_1, window_bounds = array<i64: 128, 256>}, {transform_indices = @transform_2, window_bounds = array<i64: 128, 128>}, {transform_indices = @transform_3, window_bounds = array<i64: 16, 128>}]} {
    %c0_i32 = arith.constant 0 : i32
    %0 = arith.cmpi eq, %arg1, %c0_i32 : i32
    %1 = arith.extui %0 : i1 to i32
    %c0_i32_0 = arith.constant 0 : i32
    %2 = arith.cmpi ne, %1, %c0_i32_0 : i32
    scf.if %2 {
      %cst_15 = arith.constant 0.000000e+00 : f32
      %25 = vector.broadcast %cst_15 : f32 to vector<16x128xf32>
      %c0_16 = arith.constant 0 : index
      %c0_17 = arith.constant 0 : index
      %26 = vector.load %arg6[%c0_16, %c0_17] : memref<16x128xf32, #tpu.memory_space<vmem>>, vector<16x128xf32>
      tpu.vector_store %arg6[%c0_16, %c0_17], %25 {strides = array<i32>} : memref<16x128xf32, #tpu.memory_space<vmem>>, vector<16x128xf32>,
    } else {
    }
    %c0 = arith.constant 0 : index
    %c0_1 = arith.constant 0 : index
    %3 = vector.load %arg2[%c0, %c0_1] : memref<16x128xbf16, #tpu.memory_space<vmem>>, vector<16x128xbf16>
    %c0_2 = arith.constant 0 : index
    %c0_3 = arith.constant 0 : index
    %4 = vector.load %arg3[%c0_2, %c0_3] : memref<128x256xbf16, #tpu.memory_space<vmem>>, vector<128x256xbf16>
    %cst = arith.constant dense<0.000000e+00> : vector<16x256xf32>
    %5 = tpu.matmul %3, %4, %cst {dimension_numbers = #tpu.dot_dimension_numbers<[1], [0], [0], [1], [0, 0, 1, 1], [], []>} : vector<16x128xbf16>, vector<128x256xbf16>, vector<16x256xf32> -> vector<16x256xf32>
    %6 = vector.extract_strided_slice %5 {offsets = [0, 0], sizes = [16, 128], strides = [1, 1]} : vector<16x256xf32> to vector<16x128xf32>
    %7 = vector.extract_strided_slice %5 {offsets = [0, 128], sizes = [16, 128], strides = [1, 1]} : vector<16x256xf32> to vector<16x128xf32>
    %cst_4 = arith.constant 0.000000e+00 : f32
    %8 = vector.broadcast %cst_4 : f32 to vector<16x128xf32>
    %9 = arith.subf %8, %6 : vector<16x128xf32>
    %10 = math.exp %9 : vector<16x128xf32>
    %cst_5 = arith.constant 1.000000e+00 : f32
    %11 = vector.broadcast %cst_5 : f32 to vector<16x128xf32>
    %12 = arith.addf %11, %10 : vector<16x128xf32>
    %13 = tpu.reciprocal %12 {approx = true} : vector<16x128xf32> -> vector<16x128xf32>
    %14 = arith.mulf %6, %13 : vector<16x128xf32>
    %15 = arith.mulf %14, %7 : vector<16x128xf32>
    %c0_6 = arith.constant 0 : index
    %c0_7 = arith.constant 0 : index
    %16 = vector.load %arg6[%c0_6, %c0_7] : memref<16x128xf32, #tpu.memory_space<vmem>>, vector<16x128xf32>
    %17 = arith.truncf %15 : vector<16x128xf32> to vector<16x128xbf16>
    %c0_8 = arith.constant 0 : index
    %c0_9 = arith.constant 0 : index
    %18 = vector.load %arg4[%c0_8, %c0_9] : memref<128x128xbf16, #tpu.memory_space<vmem>>, vector<128x128xbf16>
    %cst_10 = arith.constant dense<0.000000e+00> : vector<16x128xf32>
    %19 = tpu.matmul %17, %18, %cst_10 {dimension_numbers = #tpu.dot_dimension_numbers<[1], [0], [0], [1], [0, 0, 1, 1], [], []>} : vector<16x128xbf16>, vector<128x128xbf16>, vector<16x128xf32> -> vector<16x128xf32>
    %20 = arith.addf %16, %19 : vector<16x128xf32>
    %c0_11 = arith.constant 0 : index
    %c0_12 = arith.constant 0 : index
    %21 = vector.load %arg6[%c0_11, %c0_12] : memref<16x128xf32, #tpu.memory_space<vmem>>, vector<16x128xf32>
    tpu.vector_store %arg6[%c0_11, %c0_12], %20 {strides = array<i32>} : memref<16x128xf32, #tpu.memory_space<vmem>>, vector<16x128xf32>,
    %c0_i32_13 = arith.constant 0 : i32
    %22 = arith.cmpi eq, %arg1, %c0_i32_13 : i32
    %23 = arith.extui %22 : i1 to i32
    %c0_i32_14 = arith.constant 0 : i32
    %24 = arith.cmpi ne, %23, %c0_i32_14 : i32
    scf.if %24 {
      %c0_15 = arith.constant 0 : index
      %c0_16 = arith.constant 0 : index
      %25 = vector.load %arg6[%c0_15, %c0_16] : memref<16x128xf32, #tpu.memory_space<vmem>>, vector<16x128xf32>
      %c0_17 = arith.constant 0 : index
      %c0_18 = arith.constant 0 : index
      %26 = vector.load %arg5[%c0_17, %c0_18] : memref<16x128xf32, #tpu.memory_space<vmem>>, vector<16x128xf32>
      tpu.vector_store %arg5[%c0_17, %c0_18], %25 {strides = array<i32>} : memref<16x128xf32, #tpu.memory_space<vmem>>, vector<16x128xf32>,
    } else {
    }
    return
  }
  func.func @transform_0(%arg0: i32, %arg1: i32) -> (i32, i32) {
    %c0_i32 = arith.constant 0 : i32
    %c0_i32_0 = arith.constant 0 : i32
    return %arg0, %c0_i32 : i32, i32
  }
  func.func @transform_1(%arg0: i32, %arg1: i32) -> (i32, i32) {
    %c0_i32 = arith.constant 0 : i32
    %c0_i32_0 = arith.constant 0 : i32
    return %c0_i32, %arg1 : i32, i32
  }
  func.func @transform_2(%arg0: i32, %arg1: i32) -> (i32, i32) {
    %c0_i32 = arith.constant 0 : i32
    %c0_i32_0 = arith.constant 0 : i32
    return %arg1, %c0_i32 : i32, i32
  }
  func.func @transform_3(%arg0: i32, %arg1: i32) -> (i32, i32) {
    %c0_i32 = arith.constant 0 : i32
    %c0_i32_0 = arith.constant 0 : i32
    return %arg0, %c0_i32 : i32, i32
  }
}

</mosaic_0001>

<bundles_post_ra>
// kernel: tpu_custom_call.1
= control target key start
LH: loop header
LB: loop body
LE: loop exit
PB: predicated region body
PF: predicated region fallthrough
CT: control target
= control target key end

     0   :  { %8 = vsyncpa [#allocation4], 0  ;;  %s646_s0 = inlined_call_operand.hbm [shape: bf16[16,128], index: 0, kind: input, shape index: {}]   ;;  %s647_s1 = inlined_call_operand.hbm [shape: bf16[128,256], index: 1, kind: input, shape index: {}]   ;;  %s648_s2 = inlined_call_operand.hbm [shape: bf16[128,128], index: 2, kind: input, shape index: {}]   ;;  %s649_s3 = inlined_call_operand.hbm [shape: f32[16,128], index: 3, kind: output, shape index: {}]  }
   0x1   :  { %9 = vsyncpa [#allocation7], 0 }
   0x2   :  { %10 = vsyncpa [#allocation5], 0  ;;  %s561_s12 = smov [#allocation6]   ;;  %s467_s16 = scalar_lea.hbm %s647_s1, 2048 }
   0x3   :  { %s28_s13 = sshll.u32 %s561_s12, 4  ;;  %p468_p0 = scmp.ne.s32.totalorder %s647_s1, %s467_s16  ;;  %s29_s13 = int_to_ptr.vmem [resolvable:$true] %s28_s13 }
   0x4   :  { %p471_p1 = scmp.lt.u32.totalorder %s467_s16, %s647_s1 }
   0x6   :  { %p473_p2 = pnand %p471_p1, %p468_p0 }
   0x8   :  { %476 = shalt.err (!%p473_p2)
}
   0x9   :  { %s477_s21 = scalar_lea.vmem %s29_s13, 2048  ;;  %p482_p4 = scmp.lt.s32.totalorder %s29_s13, %s29_s13 }
   0xa   :  { %p478_p3 = scmp.ne.s32.totalorder %s29_s13, %s477_s21  ;;  %p483_p5 = scmp.lt.s32.totalorder %s477_s21, %s477_s21 }
   0xc   :  { %p484_p6 = por %p483_p5, %p482_p4 }
   0xe   :  { %p485_p7 = pnand %p484_p6, %p478_p3 }
  0x10   :  { %488 = shalt.err (!%p485_p7)
}
  0x11   :  { %s562_s22 = smov 128   ;;  %s563_s23 = smov 8  }
  0x12   :  { %34 = dma.hbm_to_vmem [thread:$0]  %s647_s1, 2048, %s29_s13, [#allocation7], %s562_s22, %s562_s22, %s563_s23  }
  0x13   :  { %s564_s26 = smov [#allocation3]   ;;  %s489_s30 = scalar_lea.hbm %s646_s0, 128 }
  0x14   :  { %s16_s27 = sshll.u32 %s564_s26, 4  ;;  %p490_p8 = scmp.ne.s32.totalorder %s646_s0, %s489_s30  ;;  %s17_s27 = int_to_ptr.vmem [resolvable:$true] %s16_s27 }
  0x15   :  { %p493_p9 = scmp.lt.u32.totalorder %s489_s30, %s646_s0 }
  0x17   :  { %p495_p10 = pnand %p493_p9, %p490_p8 }
  0x19   :  { %498 = shalt.err (!%p495_p10)
}
  0x1a   :  { %s499_s8 = scalar_lea.vmem %s17_s27, 128  ;;  %p504_p12 = scmp.lt.s32.totalorder %s17_s27, %s17_s27 }
  0x1b   :  { %p500_p11 = scmp.ne.s32.totalorder %s17_s27, %s499_s8  ;;  %p505_p13 = scmp.lt.s32.totalorder %s499_s8, %s499_s8 }
  0x1d   :  { %p506_p0 = por %p505_p13, %p504_p12 }
  0x1f   :  { %p507_p1 = pnand %p506_p0, %p500_p11 }
  0x21   :  { %510 = shalt.err (!%p507_p1)
}
  0x22   :  { %s565_s1 = smov 64   ;;  %s566_s9 = smov 4  }
  0x23   :  { %22 = dma.hbm_to_vmem [thread:$0]  %s646_s0, 128, %s17_s27, [#allocation4], %s565_s1, %s565_s1, %s566_s9  }
  0x24   :  { %s567_s12 = smov [#allocation8]   ;;  %s511_s16 = scalar_lea.hbm %s648_s2, 1024 }
  0x25   :  { %s40_s13 = sshll.u32 %s567_s12, 4  ;;  %p512_p2 = scmp.ne.s32.totalorder %s648_s2, %s511_s16  ;;  %s41_s13 = int_to_ptr.vmem [resolvable:$true] %s40_s13 }
  0x26   :  { %p515_p3 = scmp.lt.u32.totalorder %s511_s16, %s648_s2 }
  0x28   :  { %p517_p4 = pnand %p515_p3, %p512_p2 }
  0x2a   :  { %520 = shalt.err (!%p517_p4)
}
  0x2b   :  { %s521_s21 = scalar_lea.vmem %s41_s13, 1024  ;;  %p526_p6 = scmp.lt.s32.totalorder %s41_s13, %s41_s13 }
  0x2c   :  { %p522_p5 = scmp.ne.s32.totalorder %s41_s13, %s521_s21  ;;  %p527_p7 = scmp.lt.s32.totalorder %s521_s21, %s521_s21 }
  0x2e   :  { %p528_p8 = por %p527_p7, %p526_p6 }
  0x30   :  { %p529_p9 = pnand %p528_p8, %p522_p5 }
  0x32   :  { %532 = shalt.err (!%p529_p9)
}
  0x33   :  { %46 = dma.hbm_to_vmem [thread:$0]  %s648_s2, 1024, %s41_s13, [#allocation7], %s565_s1, %s565_s1, %s566_s9  }
  0x34   :  { %555 = dma.done.wait [#allocation4], 128  }
  0x35   :  { %556 = vsyncadd [#allocation4], 4294967168 }
  0x36   :  { %557 = dma.done.wait [#allocation7], 3072  }
  0x37   :  { %558 = vsyncadd [#allocation7], 4294964224  ;;  %v568_v0 = vmov 0   ;;  %v426_v1 = vld [vmem:[#allocation6 + $0x4] ss:$8 sps:$4 sm:$0xff]   ;;  %v450_v17 = vld [vmem:[#allocation3] sm:$0xff]  }
  0x38   :  { %199 = vmatprep.mubr.bf16.mxu0 %v568_v0  ;;  %v428_v2 = vld [vmem:[#allocation6] ss:$8 sps:$4 sm:$0xff]   ;;  %167 = vmatprep.subr.bf16.mxu0 %v426_v1  ;;  %v429_v3 = vld [vmem:[#allocation6 + $0x14] ss:$8 sps:$4 sm:$0xff]   ;;  %v431_v4 = vld [vmem:[#allocation6 + $0x10] ss:$8 sps:$4 sm:$0xff]  }
  0x39   :  { %168 = vmatpush1.bf16.msra.mxu0 %v428_v2  ;;  %v432_v5 = vld [vmem:[#allocation6 + $0x24] ss:$8 sps:$4 sm:$0xff]   ;;  %v434_v6 = vld [vmem:[#allocation6 + $0x20] ss:$8 sps:$4 sm:$0xff]   ;;  %v435_v7 = vld [vmem:[#allocation6 + $0x34] ss:$8 sps:$4 sm:$0xff]  }
  0x3a   :  { %169 = vmatprep.subr.bf16.mxu0 %v429_v3  ;;  %v437_v8 = vld [vmem:[#allocation6 + $0x30] ss:$8 sps:$4 sm:$0xff]   ;;  %v438_v9 = vld [vmem:[#allocation6 + $0x44] ss:$8 sps:$4 sm:$0xff]   ;;  %v440_v10 = vld [vmem:[#allocation6 + $0x40] ss:$8 sps:$4 sm:$0xff]  }
  0x3b   :  { %v441_v11 = vld [vmem:[#allocation6 + $0x54] ss:$8 sps:$4 sm:$0xff]   ;;  %v443_v12 = vld [vmem:[#allocation6 + $0x50] ss:$8 sps:$4 sm:$0xff]   ;;  %v444_v13 = vld [vmem:[#allocation6 + $0x64] ss:$8 sps:$4 sm:$0xff]  }
  0x3c   :  { %v446_v14 = vld [vmem:[#allocation6 + $0x60] ss:$8 sps:$4 sm:$0xff]   ;;  %v447_v15 = vld [vmem:[#allocation6 + $0x74] ss:$8 sps:$4 sm:$0xff]   ;;  %v449_v16 = vld [vmem:[#allocation6 + $0x70] ss:$8 sps:$4 sm:$0xff]  }
  0x3d   :  { %170 = vmatpush1.bf16.msra.mxu0 %v431_v4  ;;  %v451_v18 = vld [vmem:[#allocation8] sm:$0xff]   ;;  %v569_v19 = vmov 0.0   ;;  %v452_v20 = vld [vmem:[#allocation8 + $0x8] sm:$0xff]   ;;  %v453_v21 = vld [vmem:[#allocation8 + $0x10] sm:$0xff]   ;;  %vm570_vm0 = vmmov 0   ;;  %s571_s2 = smov [#allocation9]  }
  0x3e   :  { %171 = vmatprep.subr.bf16.mxu0 %v432_v5  ;;  %395 = vmatprep.subr.bf16.mxu1 %v569_v19  ;;  %v454_v22 = vld [vmem:[#allocation8 + $0x18] sm:$0xff]   ;;  %v455_v23 = vld [vmem:[#allocation8 + $0x20] sm:$0xff]   ;;  %v456_v24 = vld [vmem:[#allocation8 + $0x28] sm:$0xff]   ;;  %s348_s25 = sshll.u32 %s571_s2, 4  ;;  %s349_s25 = int_to_ptr.vmem [resolvable:$true] %s348_s25 }
  0x3f   :  { %396 = vmatpush3.bf16.msra.mxu1 %v451_v18  ;;  %v457_v25 = vld [vmem:[#allocation8 + $0x30] sm:$0xff]   ;;  %v458_v26 = vld [vmem:[#allocation8 + $0x38] sm:$0xff]   ;;  %411 = vmatprep.mubr.msk.bf16.mxu1 %vm570_vm0, %v569_v19  ;;  %s533_s26 = scalar_lea.vmem %s349_s25, 256  ;;  %p538_p11 = scmp.lt.s32.totalorder %s349_s25, %s349_s25 }
  0x40   :  { %397 = vmatprep.subr.bf16.mxu1 %v569_v19  ;;  %p534_p10 = scmp.ne.s32.totalorder %s349_s25, %s533_s26  ;;  %p539_p12 = scmp.lt.s32.totalorder %s533_s26, %s533_s26 }
  0x41   :  { %172 = vmatpush1.bf16.msra.mxu0 %v434_v6 }
  0x42   :  { %173 = vmatprep.subr.bf16.mxu0 %v435_v7  ;;  %p540_p13 = por %p539_p12, %p538_p11 }
  0x43   :  { %398 = vmatpush3.bf16.msra.mxu1 %v452_v20 }
  0x44   :  { %399 = vmatprep.subr.bf16.mxu1 %v569_v19  ;;  %p541_p0 = pnand %p540_p13, %p534_p10 }
  0x45   :  { %174 = vmatpush1.bf16.msra.mxu0 %v437_v8 }
  0x46   :  { %175 = vmatprep.subr.bf16.mxu0 %v438_v9 }
  0x47   :  { %400 = vmatpush3.bf16.msra.mxu1 %v453_v21 }
  0x48   :  { %401 = vmatprep.subr.bf16.mxu1 %v569_v19 }
  0x49   :  { %176 = vmatpush1.bf16.msra.mxu0 %v440_v10 }
  0x4a   :  { %177 = vmatprep.subr.bf16.mxu0 %v441_v11 }
  0x4b   :  { %402 = vmatpush3.bf16.msra.mxu1 %v454_v22 }
  0x4c   :  { %403 = vmatprep.subr.bf16.mxu1 %v569_v19 }
  0x4d   :  { %178 = vmatpush1.bf16.msra.mxu0 %v443_v12 }
  0x4e   :  { %179 = vmatprep.subr.bf16.mxu0 %v444_v13 }
  0x4f   :  { %404 = vmatpush3.bf16.msra.mxu1 %v455_v23 }
  0x50   :  { %405 = vmatprep.subr.bf16.mxu1 %v569_v19 }
  0x51   :  { %180 = vmatpush1.bf16.msra.mxu0 %v446_v14 }
  0x52   :  { %181 = vmatprep.subr.bf16.mxu0 %v447_v15 }
  0x53   :  { %406 = vmatpush3.bf16.msra.mxu1 %v456_v24 }
  0x54   :  { %407 = vmatprep.subr.bf16.mxu1 %v569_v19 }
  0x55   :  { %182 = vmatpush1.bf16.msra.mxu0 %v449_v16 }
  0x57   :  { %408 = vmatpush3.bf16.msra.mxu1 %v457_v25 }
  0x58   :  { %200 = vmatmul.mubr.bf16.vlgmr.msra.gmra.mrb[0].mxu0 %v450_v17  ;;  %409 = vmatprep.subr.bf16.mxu1 %v569_v19 }
  0x5b   :  { %410 = vmatpush3.bf16.msra.mxu1 %v458_v26 }
 0x12b   :  { %v201_v27 = vpop.f32.mrb[0].mxu0 }
 0x12c   :  { %v210_v28 = vsub.f32 0.0, %v201_v27  ;;  %v203_v29 = vpop.f32.mrb[1].mxu0 }
 0x12d   :  { %v205_v30 = vpop.f32.mrb[2].mxu0 }
 0x12e   :  { %v212_v31 = vmul.f32 1.442695, %v210_v28  ;;  %v211_v32 = vsub.f32 0.0, %v205_v30  ;;  %v207_v33 = vpop.f32.mrb[3].mxu0 }
 0x130   :  { %459 = vpow2.f32 %v212_v31  ;;  %v214_v34 = vmul.f32 1.442695, %v211_v32 }
 0x132   :  { %461 = vpow2.f32 %v214_v34 }
 0x13a   :  { %v460_v35 = vpop.eup %459 }
 0x13b   :  { %v216_v36 = vadd.f32 1.0, %v460_v35 }
 0x13c   :  { %v462_v37 = vpop.eup %461 }
 0x13d   :  { %463 = vrcp.f32 %v216_v36  ;;  %v217_v38 = vadd.f32 1.0, %v462_v37 }
 0x13f   :  { %465 = vrcp.f32 %v217_v38 }
 0x147   :  { %v464_v39 = vpop.eup %463 }
 0x148   :  { %v220_v40 = vmul.f32 %v464_v39, %v201_v27 }
 0x149   :  { %v466_v41 = vpop.eup %465 }
 0x14a   :  { %v222_v42 = vmul.f32 %v220_v40, %v203_v29  ;;  %v221_v43 = vmul.f32 %v466_v41, %v205_v30 }
 0x14c   :  { %v223_v44 = vmul.f32 %v221_v43, %v207_v33 }
 0x14e   :  { %v226_v45 = vpack.c.bf16 %v223_v44, %v222_v42 }
 0x150   :  { %412 = vmatmul.mubr.bf16.vlgmr.msra.gmra.mrb[0].mxu1 %v226_v45 }
 0x223   :  { %v325_v46 = vpop.f32.mrb[0].mxu1 }
 0x224   :  { %341 = vst [vmem:[#allocation9] sm:$0xff] %v325_v46  ;;  %v413_v47 = vpop.f32.mrb[1].mxu1 }
 0x225   :  { %v328_v48 = vpop.f32.mrb[2].mxu1 }
 0x226   :  { %342 = vst [vmem:[#allocation9 + $0x8] sm:$0xff] %v328_v48  ;;  %v414_v49 = vpop.f32.mrb[3].mxu1 }
 0x227   :  { %544 = shalt.err (!%p541_p0)
}
 0x228   :  { %s545_s29 = scalar_lea.hbm %s649_s3, 256 }
 0x229   :  { %p546_p1 = scmp.ne.s32.totalorder %s649_s3, %s545_s29  ;;  %p549_p2 = scmp.lt.u32.totalorder %s545_s29, %s649_s3 }
 0x22b   :  { %p551_p3 = pnand %p549_p2, %p546_p1 }
 0x22d   :  { %554 = shalt.err (!%p551_p3)
}
 0x22e   :  { %354 = dma.vmem_to_hbm [thread:$0]  %s349_s25, 256, %s649_s3, [#allocation5], %s562_s22, %s562_s22, %s563_s23  }
 0x22f   :  { %559 = dma.done.wait [#allocation5], 256  }
 0x230   :  { %560 = vsyncadd [#allocation5], 4294967040 }
 0x231   :  { %358 = vsyncpa [#allocation4], 1 }
 0x232   :  { %359 = vsyncpa [#allocation7], 1 }
 0x233   :  { %360 = vsyncpa [#allocation5], 1 }

</bundles_post_ra>
